<compile_context>
chip_gen: v6e
topology: v6e:2x2x1
jax: 0.10.0
libtpu: 0.0.40
codegen_flags: <defaults>
</compile_context>

<pallas_src>
import math

import jax
import jax.numpy as jnp
from jax.experimental import pallas as pl
from jax.experimental.pallas import tpu as pltpu


# ---------------- configuration (synthetic, small) ----------------
D_MODEL = 32          # config.d_model
N_HEADS = 4           # config.num_heads
D_KV = 8              # config.d_kv
INNER = N_HEADS * D_KV
NUM_BUCKETS = 32      # config.relative_attention_num_buckets
MAX_DISTANCE = 128    # config.relative_attention_max_distance
IS_DECODER = False    # config.is_decoder
# dropout_rate is irrelevant in eval mode (nn.functional.dropout(training=False))


# ---------------- relative position bias (glue, plain JAX) ----------------
def _relative_position_bucket(relative_position, bidirectional=True,
                              num_buckets=32, max_distance=128):
    relative_buckets = jnp.zeros_like(relative_position)
    if bidirectional:
        num_buckets //= 2
        relative_buckets = relative_buckets + (
            (relative_position > 0).astype(jnp.int32) * num_buckets)
        relative_position = jnp.abs(relative_position)
    else:
        relative_position = -jnp.minimum(relative_position,
                                         jnp.zeros_like(relative_position))
    max_exact = num_buckets // 2
    is_small = relative_position < max_exact
    # clamp to >=1 before the log so the masked-out branch never produces
    # int(-inf) (the small branch is selected for those positions anyway).
    safe_rel = jnp.maximum(relative_position, 1).astype(jnp.float32)
    rel_pos_if_large = max_exact + (
        jnp.log(safe_rel / max_exact)
        / math.log(max_distance / max_exact)
        * (num_buckets - max_exact)
    ).astype(jnp.int32)
    rel_pos_if_large = jnp.minimum(
        rel_pos_if_large, jnp.full_like(rel_pos_if_large, num_buckets - 1))
    relative_buckets = relative_buckets + jnp.where(
        is_small, relative_position, rel_pos_if_large)
    return relative_buckets


def compute_position_bias(rel_attn_bias_table, query_length, key_length):
    # rel_attn_bias_table: (NUM_BUCKETS, N_HEADS) — nn.Embedding weight
    context_position = jnp.arange(query_length, dtype=jnp.int32)[:, None]
    memory_position = jnp.arange(key_length, dtype=jnp.int32)[None, :]
    relative_position = memory_position - context_position
    buckets = _relative_position_bucket(
        relative_position,
        bidirectional=not IS_DECODER,
        num_buckets=NUM_BUCKETS,
        max_distance=MAX_DISTANCE,
    )
    values = rel_attn_bias_table[buckets]            # (q, k, H)
    values = jnp.transpose(values, (2, 0, 1))        # (H, q, k)
    return values


# ---------------- Pallas kernel ----------------
def t5_attention_kernel(hq_ref, hkv_ref, wq_ref, wkv_ref, wo_ref, bias_ref,
                        o_ref, q_scr, m_scr, l_scr, acc_scr):
    # hq_ref:   (tq, D_MODEL)        bf16   query-side hidden tile (batch squeezed)
    # hkv_ref:  (tk, D_MODEL)        bf16   key/value-side hidden tile
    # wq_ref:   (D_MODEL, INNER)     bf16
    # wkv_ref:  (D_MODEL, 2*INNER)   bf16   [Wk | Wv]
    # wo_ref:   (INNER, D_MODEL)     bf16
    # bias_ref: (H, tq, tk)          bf16   position-bias tile
    # o_ref:    (tq, D_MODEL)        f32
    # scratch:  q_scr (H,tq,d_kv) bf16; m/l (H,tq,1) f32; acc (H,tq,d_kv) f32
    ki = pl.program_id(2)
    nk = pl.num_programs(2)

    @pl.when(ki == 0)
    def _init():
        # Q projection: ONE lane-dense 2-D MXU matmul (full K = D_MODEL), then a
        # cheap per-head split kept in VMEM scratch across the kv loop.
        q2d = jnp.dot(hq_ref[...], wq_ref[...],
                      preferred_element_type=jnp.float32)            # (tq, INNER)
        q_scr[...] = jnp.stack(
            [q2d[:, h * D_KV:(h + 1) * D_KV] for h in range(N_HEADS)],
            axis=0).astype(jnp.bfloat16)                             # (H, tq, d_kv)
        m_scr[...] = jnp.full(m_scr.shape, -jnp.inf, dtype=m_scr.dtype)
        l_scr[...] = jnp.zeros(l_scr.shape, dtype=l_scr.dtype)
        acc_scr[...] = jnp.zeros(acc_scr.shape, dtype=acc_scr.dtype)

    # Fused K/V projection for this kv tile: one (tk, D) @ (D, 2*INNER) matmul.
    # TODO(synk): for very large S this recomputes K/V once per q block; hoist
    # the projection into its own pass (or cache per kv block) if NQ gets large.
    kv2d = jnp.dot(hkv_ref[...], wkv_ref[...],
                   preferred_element_type=jnp.float32)                # (tk, 2*INNER)
    k = jnp.stack(
        [kv2d[:, h * D_KV:(h + 1) * D_KV] for h in range(N_HEADS)],
        axis=0).astype(jnp.bfloat16)                                  # (H, tk, d_kv)
    v = jnp.stack(
        [kv2d[:, INNER + h * D_KV:INNER + (h + 1) * D_KV]
         for h in range(N_HEADS)],
        axis=0).astype(jnp.bfloat16)                                  # (H, tk, d_kv)

    # T5: no 1/sqrt(d_kv) scaling.  Contract last dims directly (no explicit .T).
    s = jnp.einsum('hqd,hkd->hqk', q_scr[...], k,
                   preferred_element_type=jnp.float32)                # (H, tq, tk)
    s = s + bias_ref[...].astype(jnp.float32)
    # TODO(synk): attention mask / layer_head_mask / past_key_value cache /
    # cross-attention branches of T5Attention are not exercised here.

    # Online softmax (f32 stats in VMEM scratch).
    m_prev = m_scr[...]
    m_new = jnp.maximum(m_prev, jnp.max(s, axis=-1, keepdims=True))
    alpha = jnp.exp(m_prev - m_new)
    p = jnp.exp(s - m_new)
    l_scr[...] = alpha * l_scr[...] + jnp.sum(p, axis=-1, keepdims=True)
    acc_scr[...] = alpha * acc_scr[...] + jnp.einsum(
        'hqk,hkd->hqd', p.astype(jnp.bfloat16), v,
        preferred_element_type=jnp.float32)
    m_scr[...] = m_new
    # dropout: eval mode -> identity

    @pl.when(ki == nk - 1)
    def _finalize():
        # approx reciprocal runs on the otherwise idle EUP slot
        ctx = acc_scr[...] * pl.reciprocal(l_scr[...], approx=True)   # (H, tq, d_kv)
        # Merge heads back onto lanes and do ONE full-K output projection so the
        # head reduction happens inside the MXU accumulator (no VPU head-sum).
        ctx2d = jnp.concatenate(
            [ctx[h] for h in range(N_HEADS)], axis=-1)                # (tq, INNER)
        out = jnp.dot(ctx2d.astype(jnp.bfloat16), wo_ref[...],
                      preferred_element_type=jnp.float32)             # (tq, D_MODEL)
        # NOTE: with the synthetic D_MODEL=32 this store uses 32/128 lanes; real
        # T5 d_model is a multiple of 128, so the store is lane-dense.
        o_ref[...] = out.astype(o_ref.dtype)


def _padded_block_bytes(shape, dtype):
    dims = list(shape)
    dims[-1] = pl.cdiv(dims[-1], 128) * 128
    if len(dims) >= 2:
        dims[-2] = pl.cdiv(dims[-2], 8) * 8
    n = 1
    for d in dims:
        n *= int(d)
    return n * jnp.dtype(dtype).itemsize


def t5_attention(hidden_states, wq, wk, wv, wo, rel_attn_bias_table,
                 block_q=256, block_kv=256):
    """hidden_states: (B, S, D_MODEL) float32.  Returns (out, position_bias)."""
    B, S, D = hidden_states.shape
    assert D == D_MODEL
    out_dtype = hidden_states.dtype

    # v6e/v7x MXU is 2x256x256 -> 256 tiles by default; pass 128 for v5e.
    block_q = min(block_q, S)
    block_kv = min(block_kv, S)
    assert S % block_q == 0 and S % block_kv == 0
    nq, nk = S // block_q, S // block_kv

    # Position bias (compute_bias): tiny embedding gather, done in glue JAX.
    # Shipped to the kernel in bf16 and tiled per (q_block, kv_block), so the
    # full (H, S, S) table never has to sit in VMEM at once.
    # TODO(synk): for very long S, compute the bias tile in-kernel from the
    # (NUM_BUCKETS, H) table instead of materializing (H, S, S) in HBM.
    position_bias = compute_position_bias(
        rel_attn_bias_table, S, S).astype(jnp.float32)           # (H, S, S)
    bias_bf16 = position_bias.astype(jnp.bfloat16)

    # Lane-dense 2-D projection weights (single full-D contraction per matmul).
    wq_2d = wq.astype(jnp.bfloat16)                              # (D, INNER)
    wkv_2d = jnp.concatenate([wk, wv], axis=1).astype(jnp.bfloat16)  # (D, 2*INNER)
    wo_2d = wo.astype(jnp.bfloat16)                              # (INNER, D)
    h_bf16 = hidden_states.astype(jnp.bfloat16)

    # VMEM budget from the chosen tiles (double-buffered blocks + scratch),
    # capped at v7x's 64 MiB so the same tiling holds on every generation.
    block_bytes = (
        _padded_block_bytes((block_q, D_MODEL), jnp.bfloat16) +
        _padded_block_bytes((block_kv, D_MODEL), jnp.bfloat16) +
        _padded_block_bytes((D_MODEL, INNER), jnp.bfloat16) +
        _padded_block_bytes((D_MODEL, 2 * INNER), jnp.bfloat16) +
        _padded_block_bytes((INNER, D_MODEL), jnp.bfloat16) +
        _padded_block_bytes((N_HEADS, block_q, block_kv), jnp.bfloat16) +
        _padded_block_bytes((block_q, D_MODEL), out_dtype))
    scratch_bytes = (
        _padded_block_bytes((N_HEADS, block_q, D_KV), jnp.bfloat16) +
        2 * _padded_block_bytes((N_HEADS, block_q, 1), jnp.float32) +
        _padded_block_bytes((N_HEADS, block_q, D_KV), jnp.float32))
    vmem_limit = 2 * block_bytes + scratch_bytes + (4 << 20)
    vmem_limit = int(min(max(vmem_limit, 16 << 20), 64 << 20))

    out = pl.pallas_call(
        t5_attention_kernel,
        out_shape=jax.ShapeDtypeStruct((B, S, D_MODEL), out_dtype),
        grid_spec=pltpu.PrefetchScalarGridSpec(
            num_scalar_prefetch=0,
            # (B, q_blocks, kv_blocks): kv innermost ("arbitrary"); batch and
            # q blocks are "parallel" so megacore can split them and the
            # pipeline has more than 2 steps to overlap DMA with compute.
            grid=(B, nq, nk),
            in_specs=[
                pl.BlockSpec((None, block_q, D_MODEL),
                             lambda b, qi, ki: (b, qi, 0)),
                pl.BlockSpec((None, block_kv, D_MODEL),
                             lambda b, qi, ki: (b, ki, 0)),
                pl.BlockSpec((D_MODEL, INNER), lambda b, qi, ki: (0, 0)),
                pl.BlockSpec((D_MODEL, 2 * INNER), lambda b, qi, ki: (0, 0)),
                pl.BlockSpec((INNER, D_MODEL), lambda b, qi, ki: (0, 0)),
                pl.BlockSpec((N_HEADS, block_q, block_kv),
                             lambda b, qi, ki: (0, qi, ki)),
            ],
            out_specs=pl.BlockSpec((None, block_q, D_MODEL),
                                   lambda b, qi, ki: (b, qi, 0)),
            scratch_shapes=[
                pltpu.VMEM((N_HEADS, block_q, D_KV), jnp.bfloat16),   # q tile
                pltpu.VMEM((N_HEADS, block_q, 1), jnp.float32),       # m
                pltpu.VMEM((N_HEADS, block_q, 1), jnp.float32),       # l
                pltpu.VMEM((N_HEADS, block_q, D_KV), jnp.float32),    # acc
            ]),
        compiler_params=pltpu.CompilerParams(
            dimension_semantics=("parallel", "parallel", "arbitrary"),
            vmem_limit_bytes=vmem_limit),
    )(h_bf16, h_bf16, wq_2d, wkv_2d, wo_2d, bias_bf16)
    return out, position_bias


# ---------------- references for verification ----------------
def t5_attention_ref_f32(hidden_states, wq, wk, wv, wo, rel_attn_bias_table):
    B, S, _ = hidden_states.shape
    q = hidden_states @ wq
    k = hidden_states @ wk
    v = hidden_states @ wv

    def split(x):  # (B,S,INNER) -> (B,H,S,d_kv)
        return x.reshape(B, S, N_HEADS, D_KV).transpose(0, 2, 1, 3)

    q, k, v = split(q), split(k), split(v)
    scores = jnp.einsum("bhqd,bhkd->bhqk", q, k)
    bias = compute_position_bias(rel_attn_bias_table, S, S)[None]
    scores = scores + bias
    attn = jax.nn.softmax(scores.astype(jnp.float32), axis=-1)
    ctx = jnp.einsum("bhqk,bhkd->bhqd", attn, v)
    ctx = ctx.transpose(0, 2, 1, 3).reshape(B, S, INNER)
    return ctx @ wo


def t5_attention_ref_bf16(hidden_states, wq, wk, wv, wo, rel_attn_bias_table):
    """Reference matching the kernel's bf16-operand / f32-accumulate recipe."""
    B, S, _ = hidden_states.shape
    h = hidden_states.astype(jnp.bfloat16)

    def proj(w):
        return jnp.einsum('bsd,dk->bsk', h, w.astype(jnp.bfloat16),
                          preferred_element_type=jnp.float32
                          ).astype(jnp.bfloat16)

    def split(x):  # (B,S,INNER) -> (B,H,S,d_kv)
        return x.reshape(B, S, N_HEADS, D_KV).transpose(0, 2, 1, 3)

    q, k, v = split(proj(wq)), split(proj(wk)), split(proj(wv))
    scores = jnp.einsum('bhqd,bhkd->bhqk', q, k,
                        preferred_element_type=jnp.float32)
    bias = compute_position_bias(rel_attn_bias_table, S, S)
    bias = bias.astype(jnp.bfloat16).astype(jnp.float32)   # kernel sees bf16 bias
    scores = scores + bias[None]
    p = jax.nn.softmax(scores, axis=-1)
    ctx = jnp.einsum('bhqk,bhkd->bhqd', p.astype(jnp.bfloat16), v,
                     preferred_element_type=jnp.float32)
    ctx2d = ctx.transpose(0, 2, 1, 3).reshape(B, S, INNER).astype(jnp.bfloat16)
    out = jnp.einsum('bsk,kd->bsd', ctx2d, wo.astype(jnp.bfloat16),
                     preferred_element_type=jnp.float32)
    return out.astype(hidden_states.dtype)


if __name__ == "__main__":
    key = jax.random.PRNGKey(0)
    k0, k1, k2, k3, k4, k5 = jax.random.split(key, 6)

    B, S = 2, 8
    hidden_states = jax.random.normal(k0, (B, S, D_MODEL), dtype=jnp.float32)

    # deterministic parameter init (Linear weights stored as (in, out))
    scale = 1.0 / math.sqrt(D_MODEL)
    wq = jax.random.normal(k1, (D_MODEL, INNER), dtype=jnp.float32) * scale
    wk = jax.random.normal(k2, (D_MODEL, INNER), dtype=jnp.float32) * scale
    wv = jax.random.normal(k3, (D_MODEL, INNER), dtype=jnp.float32) * scale
    wo = jax.random.normal(k4, (INNER, D_MODEL), dtype=jnp.float32) * scale
    rel_attn_bias_table = jax.random.normal(
        k5, (NUM_BUCKETS, N_HEADS), dtype=jnp.float32) * 0.1

    out, position_bias = t5_attention(
        hidden_states, wq, wk, wv, wo, rel_attn_bias_table)
    out = jax.block_until_ready(out)
    assert out.shape == (B, S, D_MODEL)

    # tight check against a bf16-matched reference (same mixed-precision recipe)
    ref_bf16 = t5_attention_ref_bf16(
        hidden_states, wq, wk, wv, wo, rel_attn_bias_table)
    assert jnp.allclose(out, ref_bf16, atol=2e-2, rtol=2e-2), \
        "mismatch vs bf16-matched reference"

    # sanity check against the full-f32 reference (bf16 operand quantization)
    ref_f32 = t5_attention_ref_f32(
        hidden_states, wq, wk, wv, wo, rel_attn_bias_table)
    assert jnp.allclose(out, ref_f32, atol=1.5e-1, rtol=1.5e-1), \
        "mismatch vs f32 reference"

    print("KERNEL_OK")
</pallas_src>

<mosaic_0001>
module attributes {stable_mosaic.version = 11 : i64} {
  func.func @t5_attention_kernel(%arg0: i32, %arg1: i32, %arg2: i32, %arg3: memref<1x8x32xbf16, #tpu.memory_space<vmem>>, %arg4: memref<1x8x32xbf16, #tpu.memory_space<vmem>>, %arg5: memref<32x32xbf16, #tpu.memory_space<vmem>>, %arg6: memref<32x64xbf16, #tpu.memory_space<vmem>>, %arg7: memref<32x32xbf16, #tpu.memory_space<vmem>>, %arg8: memref<4x8x8xbf16, #tpu.memory_space<vmem>>, %arg9: memref<1x8x32xf32, #tpu.memory_space<vmem>>, %arg10: memref<4x8x8xbf16, #tpu.memory_space<vmem>>, %arg11: memref<4x8x1xf32, #tpu.memory_space<vmem>>, %arg12: memref<4x8x1xf32, #tpu.memory_space<vmem>>, %arg13: memref<4x8x8xf32, #tpu.memory_space<vmem>>) attributes {dimension_semantics = [#tpu.dimension_semantics<parallel>, #tpu.dimension_semantics<parallel>, #tpu.dimension_semantics<arbitrary>], iteration_bounds = array<i64: 2, 1, 1>, scalar_prefetch = 0 : i64, scratch_operands = 4 : i64, tpu.core_type = #tpu.core_type<tc>, window_params = [{transform_indices = @transform_0, window_bounds = array<i64: 1, 8, 32>}, {transform_indices = @transform_1, window_bounds = array<i64: 1, 8, 32>}, {pipeline_mode = #tpu.pipeline_mode<synchronous>, transform_indices = @transform_2, window_bounds = array<i64: 32, 32>}, {pipeline_mode = #tpu.pipeline_mode<synchronous>, transform_indices = @transform_3, window_bounds = array<i64: 32, 64>}, {pipeline_mode = #tpu.pipeline_mode<synchronous>, transform_indices = @transform_4, window_bounds = array<i64: 32, 32>}, {transform_indices = @transform_5, window_bounds = array<i64: 4, 8, 8>}, {transform_indices = @transform_6, window_bounds = array<i64: 1, 8, 32>}]} {
    %c0_i32 = arith.constant 0 : i32
    %0 = arith.cmpi eq, %arg2, %c0_i32 : i32
    %1 = arith.extui %0 : i1 to i32
    %c0_i32_0 = arith.constant 0 : i32
    %2 = arith.cmpi ne, %1, %c0_i32_0 : i32
    scf.if %2 {
      %c0_35 = arith.constant 0 : index
      %c0_36 = arith.constant 0 : index
      %c0_37 = arith.constant 0 : index
      %58 = vector.load %arg3[%c0_35, %c0_36, %c0_37] : memref<1x8x32xbf16, #tpu.memory_space<vmem>>, vector<1x8x32xbf16>
      %59 = vector.shape_cast %58 : vector<1x8x32xbf16> to vector<8x32xbf16>
      %c0_38 = arith.constant 0 : index
      %c0_39 = arith.constant 0 : index
      %60 = vector.load %arg5[%c0_38, %c0_39] : memref<32x32xbf16, #tpu.memory_space<vmem>>, vector<32x32xbf16>
      %cst_40 = arith.constant dense<0.000000e+00> : vector<8x32xf32>
      %61 = tpu.matmul %59, %60, %cst_40 {dimension_numbers = #tpu.dot_dimension_numbers<[1], [0], [0], [1], [0, 0, 1, 1], [], []>} : vector<8x32xbf16>, vector<32x32xbf16>, vector<8x32xf32> -> vector<8x32xf32>
      %62 = vector.extract_strided_slice %61 {offsets = [0, 0], sizes = [8, 8], strides = [1, 1]} : vector<8x32xf32> to vector<8x8xf32>
      %63 = vector.extract_strided_slice %61 {offsets = [0, 8], sizes = [8, 8], strides = [1, 1]} : vector<8x32xf32> to vector<8x8xf32>
      %64 = vector.extract_strided_slice %61 {offsets = [0, 16], sizes = [8, 8], strides = [1, 1]} : vector<8x32xf32> to vector<8x8xf32>
      %65 = vector.extract_strided_slice %61 {offsets = [0, 24], sizes = [8, 8], strides = [1, 1]} : vector<8x32xf32> to vector<8x8xf32>
      %66 = vector.shape_cast %62 : vector<8x8xf32> to vector<1x8x8xf32>
      %67 = vector.shape_cast %63 : vector<8x8xf32> to vector<1x8x8xf32>
      %68 = vector.shape_cast %64 : vector<8x8xf32> to vector<1x8x8xf32>
      %69 = vector.shape_cast %65 : vector<8x8xf32> to vector<1x8x8xf32>
      %70 = tpu.concatenate %66, %67, %68, %69 in 0 : vector<1x8x8xf32>, vector<1x8x8xf32>, vector<1x8x8xf32>, vector<1x8x8xf32> -> vector<4x8x8xf32>
      %71 = arith.truncf %70 : vector<4x8x8xf32> to vector<4x8x8xbf16>
      %c0_41 = arith.constant 0 : index
      %c0_42 = arith.constant 0 : index
      %c0_43 = arith.constant 0 : index
      %72 = vector.load %arg10[%c0_41, %c0_42, %c0_43] : memref<4x8x8xbf16, #tpu.memory_space<vmem>>, vector<4x8x8xbf16>
      tpu.vector_store %arg10[%c0_41, %c0_42, %c0_43], %71 {strides = array<i32>} : memref<4x8x8xbf16, #tpu.memory_space<vmem>>, vector<4x8x8xbf16>,
      %cst_44 = arith.constant 0xFF800000 : f32
      %73 = vector.broadcast %cst_44 : f32 to vector<4x8x1xf32>
      %c0_45 = arith.constant 0 : index
      %c0_46 = arith.constant 0 : index
      %c0_47 = arith.constant 0 : index
      %74 = vector.load %arg11[%c0_45, %c0_46, %c0_47] : memref<4x8x1xf32, #tpu.memory_space<vmem>>, vector<4x8x1xf32>
      tpu.vector_store %arg11[%c0_45, %c0_46, %c0_47], %73 {strides = array<i32>} : memref<4x8x1xf32, #tpu.memory_space<vmem>>, vector<4x8x1xf32>,
      %cst_48 = arith.constant 0.000000e+00 : f32
      %75 = vector.broadcast %cst_48 : f32 to vector<4x8x1xf32>
      %c0_49 = arith.constant 0 : index
      %c0_50 = arith.constant 0 : index
      %c0_51 = arith.constant 0 : index
      %76 = vector.load %arg12[%c0_49, %c0_50, %c0_51] : memref<4x8x1xf32, #tpu.memory_space<vmem>>, vector<4x8x1xf32>
      tpu.vector_store %arg12[%c0_49, %c0_50, %c0_51], %75 {strides = array<i32>} : memref<4x8x1xf32, #tpu.memory_space<vmem>>, vector<4x8x1xf32>,
      %cst_52 = arith.constant 0.000000e+00 : f32
      %77 = vector.broadcast %cst_52 : f32 to vector<4x8x8xf32>
      %c0_53 = arith.constant 0 : index
      %c0_54 = arith.constant 0 : index
      %c0_55 = arith.constant 0 : index
      %78 = vector.load %arg13[%c0_53, %c0_54, %c0_55] : memref<4x8x8xf32, #tpu.memory_space<vmem>>, vector<4x8x8xf32>
      tpu.vector_store %arg13[%c0_53, %c0_54, %c0_55], %77 {strides = array<i32>} : memref<4x8x8xf32, #tpu.memory_space<vmem>>, vector<4x8x8xf32>,
    } else {
    }
    %c0 = arith.constant 0 : index
    %c0_1 = arith.constant 0 : index
    %c0_2 = arith.constant 0 : index
    %3 = vector.load %arg4[%c0, %c0_1, %c0_2] : memref<1x8x32xbf16, #tpu.memory_space<vmem>>, vector<1x8x32xbf16>
    %4 = vector.shape_cast %3 : vector<1x8x32xbf16> to vector<8x32xbf16>
    %c0_3 = arith.constant 0 : index
    %c0_4 = arith.constant 0 : index
    %5 = vector.load %arg6[%c0_3, %c0_4] : memref<32x64xbf16, #tpu.memory_space<vmem>>, vector<32x64xbf16>
    %cst = arith.constant dense<0.000000e+00> : vector<8x64xf32>
    %6 = tpu.matmul %4, %5, %cst {dimension_numbers = #tpu.dot_dimension_numbers<[1], [0], [0], [1], [0, 0, 1, 1], [], []>} : vector<8x32xbf16>, vector<32x64xbf16>, vector<8x64xf32> -> vector<8x64xf32>
    %7 = vector.extract_strided_slice %6 {offsets = [0, 0], sizes = [8, 8], strides = [1, 1]} : vector<8x64xf32> to vector<8x8xf32>
    %8 = vector.extract_strided_slice %6 {offsets = [0, 8], sizes = [8, 8], strides = [1, 1]} : vector<8x64xf32> to vector<8x8xf32>
    %9 = vector.extract_strided_slice %6 {offsets = [0, 16], sizes = [8, 8], strides = [1, 1]} : vector<8x64xf32> to vector<8x8xf32>
    %10 = vector.extract_strided_slice %6 {offsets = [0, 24], sizes = [8, 8], strides = [1, 1]} : vector<8x64xf32> to vector<8x8xf32>
    %11 = vector.shape_cast %7 : vector<8x8xf32> to vector<1x8x8xf32>
    %12 = vector.shape_cast %8 : vector<8x8xf32> to vector<1x8x8xf32>
    %13 = vector.shape_cast %9 : vector<8x8xf32> to vector<1x8x8xf32>
    %14 = vector.shape_cast %10 : vector<8x8xf32> to vector<1x8x8xf32>
    %15 = tpu.concatenate %11, %12, %13, %14 in 0 : vector<1x8x8xf32>, vector<1x8x8xf32>, vector<1x8x8xf32>, vector<1x8x8xf32> -> vector<4x8x8xf32>
    %16 = arith.truncf %15 : vector<4x8x8xf32> to vector<4x8x8xbf16>
    %17 = vector.extract_strided_slice %6 {offsets = [0, 32], sizes = [8, 8], strides = [1, 1]} : vector<8x64xf32> to vector<8x8xf32>
    %18 = vector.extract_strided_slice %6 {offsets = [0, 40], sizes = [8, 8], strides = [1, 1]} : vector<8x64xf32> to vector<8x8xf32>
    %19 = vector.extract_strided_slice %6 {offsets = [0, 48], sizes = [8, 8], strides = [1, 1]} : vector<8x64xf32> to vector<8x8xf32>
    %20 = vector.extract_strided_slice %6 {offsets = [0, 56], sizes = [8, 8], strides = [1, 1]} : vector<8x64xf32> to vector<8x8xf32>
    %21 = vector.shape_cast %17 : vector<8x8xf32> to vector<1x8x8xf32>
    %22 = vector.shape_cast %18 : vector<8x8xf32> to vector<1x8x8xf32>
    %23 = vector.shape_cast %19 : vector<8x8xf32> to vector<1x8x8xf32>
    %24 = vector.shape_cast %20 : vector<8x8xf32> to vector<1x8x8xf32>
    %25 = tpu.concatenate %21, %22, %23, %24 in 0 : vector<1x8x8xf32>, vector<1x8x8xf32>, vector<1x8x8xf32>, vector<1x8x8xf32> -> vector<4x8x8xf32>
    %26 = arith.truncf %25 : vector<4x8x8xf32> to vector<4x8x8xbf16>
    %c0_5 = arith.constant 0 : index
    %c0_6 = arith.constant 0 : index
    %c0_7 = arith.constant 0 : index
    %27 = vector.load %arg10[%c0_5, %c0_6, %c0_7] : memref<4x8x8xbf16, #tpu.memory_space<vmem>>, vector<4x8x8xbf16>
    "tpu.trace_start"() <{level = 10 : i32, message = "hqd,hkd->hqk"}> : () -> ()
    %cst_8 = arith.constant dense<0.000000e+00> : vector<4x8x8xf32>
    %28 = tpu.matmul %27, %16, %cst_8 {dimension_numbers = #tpu.dot_dimension_numbers<[2], [2], [1], [1], [0, 0, 0, 1, 1, 1], [0], [0]>} : vector<4x8x8xbf16>, vector<4x8x8xbf16>, vector<4x8x8xf32> -> vector<4x8x8xf32>
    "tpu.trace_stop"() : () -> ()
    %c0_9 = arith.constant 0 : index
    %c0_10 = arith.constant 0 : index
    %c0_11 = arith.constant 0 : index
    %29 = vector.load %arg8[%c0_9, %c0_10, %c0_11] : memref<4x8x8xbf16, #tpu.memory_space<vmem>>, vector<4x8x8xbf16>
    %30 = arith.extf %29 : vector<4x8x8xbf16> to vector<4x8x8xf32>
    %31 = arith.addf %28, %30 : vector<4x8x8xf32>
    %c0_12 = arith.constant 0 : index
    %c0_13 = arith.constant 0 : index
    %c0_14 = arith.constant 0 : index
    %32 = vector.load %arg11[%c0_12, %c0_13, %c0_14] : memref<4x8x1xf32, #tpu.memory_space<vmem>>, vector<4x8x1xf32>
    %cst_15 = arith.constant dense<0xFF800000> : vector<4x8xf32>
    %33 = vector.multi_reduction <maximumf>, %31, %cst_15 [2] : vector<4x8x8xf32> to vector<4x8xf32>
    %34 = vector.shape_cast %33 : vector<4x8xf32> to vector<4x8x1xf32>
    %35 = arith.maximumf %32, %34 : vector<4x8x1xf32>
    %36 = arith.subf %32, %35 : vector<4x8x1xf32>
    %37 = math.exp %36 : vector<4x8x1xf32>
    %38 = vector.broadcast %35 : vector<4x8x1xf32> to vector<4x8x8xf32>
    %39 = arith.subf %31, %38 : vector<4x8x8xf32>
    %40 = math.exp %39 : vector<4x8x8xf32>
    %c0_16 = arith.constant 0 : index
    %c0_17 = arith.constant 0 : index
    %c0_18 = arith.constant 0 : index
    %41 = vector.load %arg12[%c0_16, %c0_17, %c0_18] : memref<4x8x1xf32, #tpu.memory_space<vmem>>, vector<4x8x1xf32>
    %42 = arith.mulf %37, %41 : vector<4x8x1xf32>
    %cst_19 = arith.constant dense<0.000000e+00> : vector<4x8xf32>
    %43 = vector.multi_reduction <add>, %40, %cst_19 [2] : vector<4x8x8xf32> to vector<4x8xf32>
    %44 = vector.shape_cast %43 : vector<4x8xf32> to vector<4x8x1xf32>
    %45 = arith.addf %42, %44 : vector<4x8x1xf32>
    %c0_20 = arith.constant 0 : index
    %c0_21 = arith.constant 0 : index
    %c0_22 = arith.constant 0 : index
    %46 = vector.load %arg12[%c0_20, %c0_21, %c0_22] : memref<4x8x1xf32, #tpu.memory_space<vmem>>, vector<4x8x1xf32>
    tpu.vector_store %arg12[%c0_20, %c0_21, %c0_22], %45 {strides = array<i32>} : memref<4x8x1xf32, #tpu.memory_space<vmem>>, vector<4x8x1xf32>,
    %c0_23 = arith.constant 0 : index
    %c0_24 = arith.constant 0 : index
    %c0_25 = arith.constant 0 : index
    %47 = vector.load %arg13[%c0_23, %c0_24, %c0_25] : memref<4x8x8xf32, #tpu.memory_space<vmem>>, vector<4x8x8xf32>
    %48 = vector.broadcast %37 : vector<4x8x1xf32> to vector<4x8x8xf32>
    %49 = arith.mulf %48, %47 : vector<4x8x8xf32>
    %50 = arith.truncf %40 : vector<4x8x8xf32> to vector<4x8x8xbf16>
    "tpu.trace_start"() <{level = 10 : i32, message = "hqk,hkd->hqd"}> : () -> ()
    %cst_26 = arith.constant dense<0.000000e+00> : vector<4x8x8xf32>
    %51 = tpu.matmul %50, %26, %cst_26 {dimension_numbers = #tpu.dot_dimension_numbers<[2], [1], [1], [2], [0, 0, 0, 1, 1, 2], [0], [0]>} : vector<4x8x8xbf16>, vector<4x8x8xbf16>, vector<4x8x8xf32> -> vector<4x8x8xf32>
    "tpu.trace_stop"() : () -> ()
    %52 = arith.addf %49, %51 : vector<4x8x8xf32>
    %c0_27 = arith.constant 0 : index
    %c0_28 = arith.constant 0 : index
    %c0_29 = arith.constant 0 : index
    %53 = vector.load %arg13[%c0_27, %c0_28, %c0_29] : memref<4x8x8xf32, #tpu.memory_space<vmem>>, vector<4x8x8xf32>
    tpu.vector_store %arg13[%c0_27, %c0_28, %c0_29], %52 {strides = array<i32>} : memref<4x8x8xf32, #tpu.memory_space<vmem>>, vector<4x8x8xf32>,
    %c0_30 = arith.constant 0 : index
    %c0_31 = arith.constant 0 : index
    %c0_32 = arith.constant 0 : index
    %54 = vector.load %arg11[%c0_30, %c0_31, %c0_32] : memref<4x8x1xf32, #tpu.memory_space<vmem>>, vector<4x8x1xf32>
    tpu.vector_store %arg11[%c0_30, %c0_31, %c0_32], %35 {strides = array<i32>} : memref<4x8x1xf32, #tpu.memory_space<vmem>>, vector<4x8x1xf32>,
    %c0_i32_33 = arith.constant 0 : i32
    %55 = arith.cmpi eq, %arg2, %c0_i32_33 : i32
    %56 = arith.extui %55 : i1 to i32
    %c0_i32_34 = arith.constant 0 : i32
    %57 = arith.cmpi ne, %56, %c0_i32_34 : i32
    scf.if %57 {
      %c0_35 = arith.constant 0 : index
      %c0_36 = arith.constant 0 : index
      %c0_37 = arith.constant 0 : index
      %58 = vector.load %arg13[%c0_35, %c0_36, %c0_37] : memref<4x8x8xf32, #tpu.memory_space<vmem>>, vector<4x8x8xf32>
      %c0_38 = arith.constant 0 : index
      %c0_39 = arith.constant 0 : index
      %c0_40 = arith.constant 0 : index
      %59 = vector.load %arg12[%c0_38, %c0_39, %c0_40] : memref<4x8x1xf32, #tpu.memory_space<vmem>>, vector<4x8x1xf32>
      %60 = tpu.reciprocal %59 {approx = true} : vector<4x8x1xf32> -> vector<4x8x1xf32>
      %61 = vector.broadcast %60 : vector<4x8x1xf32> to vector<4x8x8xf32>
      %62 = arith.mulf %58, %61 : vector<4x8x8xf32>
      %63 = vector.extract_strided_slice %62 {offsets = [0, 0, 0], sizes = [1, 8, 8], strides = [1, 1, 1]} : vector<4x8x8xf32> to vector<1x8x8xf32>
      %64 = vector.shape_cast %63 : vector<1x8x8xf32> to vector<8x8xf32>
      %65 = vector.extract_strided_slice %62 {offsets = [1, 0, 0], sizes = [1, 8, 8], strides = [1, 1, 1]} : vector<4x8x8xf32> to vector<1x8x8xf32>
      %66 = vector.shape_cast %65 : vector<1x8x8xf32> to vector<8x8xf32>
      %67 = vector.extract_strided_slice %62 {offsets = [2, 0, 0], sizes = [1, 8, 8], strides = [1, 1, 1]} : vector<4x8x8xf32> to vector<1x8x8xf32>
      %68 = vector.shape_cast %67 : vector<1x8x8xf32> to vector<8x8xf32>
      %69 = vector.extract_strided_slice %62 {offsets = [3, 0, 0], sizes = [1, 8, 8], strides = [1, 1, 1]} : vector<4x8x8xf32> to vector<1x8x8xf32>
      %70 = vector.shape_cast %69 : vector<1x8x8xf32> to vector<8x8xf32>
      %71 = tpu.concatenate %64, %66, %68, %70 in 1 : vector<8x8xf32>, vector<8x8xf32>, vector<8x8xf32>, vector<8x8xf32> -> vector<8x32xf32>
      %72 = arith.truncf %71 : vector<8x32xf32> to vector<8x32xbf16>
      %c0_41 = arith.constant 0 : index
      %c0_42 = arith.constant 0 : index
      %73 = vector.load %arg7[%c0_41, %c0_42] : memref<32x32xbf16, #tpu.memory_space<vmem>>, vector<32x32xbf16>
      %cst_43 = arith.constant dense<0.000000e+00> : vector<8x32xf32>
      %74 = tpu.matmul %72, %73, %cst_43 {dimension_numbers = #tpu.dot_dimension_numbers<[1], [0], [0], [1], [0, 0, 1, 1], [], []>} : vector<8x32xbf16>, vector<32x32xbf16>, vector<8x32xf32> -> vector<8x32xf32>
      %c0_44 = arith.constant 0 : index
      %c0_45 = arith.constant 0 : index
      %c0_46 = arith.constant 0 : index
      %75 = vector.load %arg9[%c0_44, %c0_45, %c0_46] : memref<1x8x32xf32, #tpu.memory_space<vmem>>, vector<1x8x32xf32>
      %76 = vector.shape_cast %75 : vector<1x8x32xf32> to vector<8x32xf32>
      %77 = vector.shape_cast %74 : vector<8x32xf32> to vector<1x8x32xf32>
      tpu.vector_store %arg9[%c0_44, %c0_45, %c0_46], %77 {strides = array<i32>} : memref<1x8x32xf32, #tpu.memory_space<vmem>>, vector<1x8x32xf32>,
    } else {
    }
    return
  }
  func.func @transform_0(%arg0: i32, %arg1: i32, %arg2: i32) -> (i32, i32, i32) {
    %c0_i32 = arith.constant 0 : i32
    %c0_i32_0 = arith.constant 0 : i32
    return %arg0, %arg1, %c0_i32 : i32, i32, i32
  }
  func.func @transform_1(%arg0: i32, %arg1: i32, %arg2: i32) -> (i32, i32, i32) {
    %c0_i32 = arith.constant 0 : i32
    %c0_i32_0 = arith.constant 0 : i32
    return %arg0, %arg2, %c0_i32 : i32, i32, i32
  }
  func.func @transform_2(%arg0: i32, %arg1: i32, %arg2: i32) -> (i32, i32) {
    %c0_i32 = arith.constant 0 : i32
    %c0_i32_0 = arith.constant 0 : i32
    %c0_i32_1 = arith.constant 0 : i32
    return %c0_i32, %c0_i32_0 : i32, i32
  }
  func.func @transform_3(%arg0: i32, %arg1: i32, %arg2: i32) -> (i32, i32) {
    %c0_i32 = arith.constant 0 : i32
    %c0_i32_0 = arith.constant 0 : i32
    %c0_i32_1 = arith.constant 0 : i32
    return %c0_i32, %c0_i32_0 : i32, i32
  }
  func.func @transform_4(%arg0: i32, %arg1: i32, %arg2: i32) -> (i32, i32) {
    %c0_i32 = arith.constant 0 : i32
    %c0_i32_0 = arith.constant 0 : i32
    %c0_i32_1 = arith.constant 0 : i32
    return %c0_i32, %c0_i32_0 : i32, i32
  }
  func.func @transform_5(%arg0: i32, %arg1: i32, %arg2: i32) -> (i32, i32, i32) {
    %c0_i32 = arith.constant 0 : i32
    %c0_i32_0 = arith.constant 0 : i32
    return %c0_i32, %arg1, %arg2 : i32, i32, i32
  }
  func.func @transform_6(%arg0: i32, %arg1: i32, %arg2: i32) -> (i32, i32, i32) {
    %c0_i32 = arith.constant 0 : i32
    %c0_i32_0 = arith.constant 0 : i32
    return %arg0, %arg1, %c0_i32 : i32, i32, i32
  }
}

</mosaic_0001>

<bundles_post_ra>
// kernel: tpu_custom_call.1
= control target key start
LH: loop header
LB: loop body
LE: loop exit
PB: predicated region body
PF: predicated region fallthrough
CT: control target
= control target key end

     0   :  { %s2402_s0 = inlined_call_operand.hbm [shape: bf16[2,8,32], index: 0, kind: input, shape index: {}]   ;;  %s2403_s1 = inlined_call_operand.hbm [shape: bf16[2,8,32], index: 1, kind: input, shape index: {}]   ;;  %s2404_s2 = inlined_call_operand.hbm [shape: bf16[32,32], index: 2, kind: input, shape index: {}]   ;;  %s2405_s3 = inlined_call_operand.hbm [shape: bf16[32,64], index: 3, kind: input, shape index: {}]   ;;  %s2406_s4 = inlined_call_operand.hbm [shape: bf16[32,32], index: 4, kind: input, shape index: {}]   ;;  %s2407_s5 = inlined_call_operand.hbm [shape: bf16[4,8,8], index: 5, kind: input, shape index: {}]   ;;  %s2408_s6 = inlined_call_operand.hbm [shape: f32[2,8,32], index: 6, kind: output, shape index: {}]  }
   0x1   :  { %2410 = sst [smem:[#allocation24_spill]] %s2402_s0 }
   0x2   :  { %2411 = sst [smem:[#allocation25_spill]] %s2404_s2 }
   0x3   :  { %2412 = sst [smem:[#allocation26_spill]] %s2405_s3 }
   0x4   :  { %2413 = sst [smem:[#allocation27_spill]] %s2406_s4 }
   0x5   :  { %11 = vsyncpa [#allocation7], 0 }
   0x6   :  { %13 = vsyncpa [#allocation7 + $0x1], 0 }
   0x7   :  { %14 = vsyncpa [#allocation10], 0 }
   0x8   :  { %16 = vsyncpa [#allocation10 + $0x1], 0 }
   0x9   :  { %17 = vsyncpa [#allocation13], 0 }
   0xa   :  { %18 = vsyncpa [#allocation16], 0 }
   0xb   :  { %19 = vsyncpa [#allocation8], 0 }
   0xc   :  { %21 = vsyncpa [#allocation8 + $0x1], 0  ;;  %s2012_s21 = smov 0   ;;  %s2014_s22 = smov 0  }
   0xd   :  { %s2016_s23 = smov 0   ;;  %s2018_s24 = smov 0  }
   0xe   :  { %s2020_s25 = smov 0   ;;  %s2022_s26 = smov 0  }
   0xf LB: > { %s2043_s27 = sadd.s32 4294967295, %s1955_s26   ;;  %p1386_p0 = scmp.ge.s32.totalorder %s1955_s26, 1  ;;  %s1955_s26 = sphi %s2022_s26, %s27_s26   ;;  %s1951_s25 = sphi %s2020_s25, %s2436_s25   ;;  %s1947_s24 = sphi %s2018_s24, %s2435_s24   ;;  %s1943_s23 = sphi %s2016_s23, %s2434_s23   ;;  %s1939_s22 = sphi %s2014_s22, %s2433_s22   ;;  %s1935_s21 = sphi %s2012_s21, %s2432_s21  }
  0x10   : > { %p2409_p1 = scmp.eq.s32.totalorder %s2043_s27, 0  ;;  %p226_p2 = scmp.lt.s32.totalorder %s1955_s26, 3 }
  0x11   : > { %s1957_s29 = smov [#allocation11]   ;;  %s1958_s8 = smov [#allocation12]  }
  0x12   : > { %p2048_p3 = pnand %p1386_p0, %p226_p2  ;;  %s238_s30 = sshll.u32 %s1957_s29, 4  ;;  %s239_s30 = int_to_ptr.vmem [resolvable:$true] %s238_s30 }
  0x13   : > { %s251_s9 = sshll.u32 %s1958_s8, 4  ;;  %s1959_s10 = smov [#allocation14]   ;;  %s252_s9 = int_to_ptr.vmem [resolvable:$true] %s251_s9 }
  0x14   : > { %p1553_p4 = pneg %p2048_p3  ;;  %s264_s11 = sshll.u32 %s1959_s10, 4  ;;  %s265_s11 = int_to_ptr.vmem [resolvable:$true] %s264_s11 }
  0x15   : > { %s1710_s12 = scalar_lea.vmem %s239_s30, 256  ;;  %p1718_p11 = scmp.lt.s32.totalorder %s239_s30, %s239_s30 }
  0x16   : > { %p2057_p6 = pnand %p1553_p4, %p2409_p1  ;;  %p1711_p8 = scmp.ne.s32.totalorder %s239_s30, %s1710_s12 }
  0x17   : > { %p1719_p12 = scmp.lt.s32.totalorder %s1710_s12, %s1710_s12 }
  0x18   : > { %p1701_p7 = pneg %p2057_p6 }
  0x19   : > { %p1720_p13 = por %p1719_p12, %p1718_p11 }
  0x1a   : > { %p1713_p9 = pnand %p1711_p8, %p1701_p7 }
  0x1c   : > { %p1714_p10 = pneg %p1713_p9 }
  0x1e   : > { %p1721_p0 = pnand %p1720_p13, %p1714_p10 }
  0x20   : > { %1724 = shalt.err (!%p1721_p0)
}
  0x21   : > { %s1960_s13 = smov 64   ;;  %s1961_s14 = smov 4  }
  0x22   : > { %s2416_s2 = sld [smem:[#allocation25_spill]]  ;;  %s1736_s17 = scalar_lea.vmem %s252_s9, 256 }
  0x23   : > { %p1737_p2 = scmp.ne.s32.totalorder %s252_s9, %s1736_s17  ;;  %p1744_p9 = scmp.lt.s32.totalorder %s252_s9, %s252_s9 }
  0x24   : > { %p1745_p10 = scmp.lt.s32.totalorder %s1736_s17, %s1736_s17 }
  0x25   : > { %p1739_p4 = pnand %p1737_p2, %p1701_p7 }
  0x26   : > { %p1746_p11 = por %p1745_p10, %p1744_p9 }
  0x27   : > { %p1740_p8 = pneg %p1739_p4 }
  0x28   : > { %1556 = dma.hbm_to_vmem [thread:$0]  (!%p2057_p6), %s2416_s2, 256, %s239_s30, [#allocation10], %s1960_s13, %s1960_s13, %s1961_s14  }
  0x29   : > { %p1747_p12 = pnand %p1746_p11, %p1740_p8 }
  0x2b   : > { %1750 = shalt.err (!%p1747_p12)
}
  0x2c   : > { %s2417_s3 = sld [smem:[#allocation26_spill]]  ;;  %s1762_s20 = scalar_lea.vmem %s265_s11, 256 }
  0x2d   : > { %p1763_p13 = scmp.ne.s32.totalorder %s265_s11, %s1762_s20  ;;  %p1770_p4 = scmp.lt.s32.totalorder %s265_s11, %s265_s11 }
  0x2e   : > { %p1771_p8 = scmp.lt.s32.totalorder %s1762_s20, %s1762_s20 }
  0x2f   : > { %p1765_p0 = pnand %p1763_p13, %p1701_p7 }
  0x30   : > { %p1772_p9 = por %p1771_p8, %p1770_p4 }
  0x31   : > { %p1766_p2 = pneg %p1765_p0 }
  0x32   : > { %1559 = dma.hbm_to_vmem [thread:$0]  (!%p2057_p6), %s2417_s3, 256, %s252_s9, [#allocation13], %s1960_s13, %s1960_s13, %s1961_s14  }
  0x33   : > { %p1773_p10 = pnand %p1772_p9, %p1766_p2 }
  0x35   : > { %1776 = shalt.err (!%p1773_p10)
}
  0x36   : > { %s2418_s4 = sld [smem:[#allocation27_spill]]  ;;  %s1962_s8 = smov [#allocation15]  }
  0x37   : > { %s280_s9 = sshll.u32 %s1962_s8, 4  ;;  %s281_s9 = int_to_ptr.vmem [resolvable:$true] %s280_s9 }
  0x38   : > { %s1788_s10 = scalar_lea.vmem %s281_s9, 256  ;;  %p1796_p0 = scmp.lt.s32.totalorder %s281_s9, %s281_s9 }
  0x39   : > { %p1789_p11 = scmp.ne.s32.totalorder %s281_s9, %s1788_s10  ;;  %p1797_p2 = scmp.lt.s32.totalorder %s1788_s10, %s1788_s10 }
  0x3b   : > { %p1791_p12 = pnand %p1789_p11, %p1701_p7  ;;  %p1798_p4 = por %p1797_p2, %p1796_p0 }
  0x3c   : > { %1562 = dma.hbm_to_vmem [thread:$0]  (!%p2057_p6), %s2418_s4, 256, %s265_s11, [#allocation13], %s1960_s13, %s1960_s13, %s1961_s14  }
  0x3d   : > { %p1792_p13 = pneg %p1791_p12 }
  0x3f   : > { %p1799_p8 = pnand %p1798_p4, %p1792_p13 }
  0x41   : > { %1802 = shalt.err (!%p1799_p8)
}
  0x42   : > { %1565 = dma.hbm_to_vmem [thread:$0]  (!%p2057_p6), %s2407_s5, 256, %s281_s9, [#allocation16], %s1960_s13, %s1960_s13, %s1961_s14  }
  0x43   : > { %s1385_s7 = sadd.s32 4294967294, %s1955_s26   ;;  %s46_s15 = sadd.s32 1, %s1951_s25 }
  0x44   : > { %p48_p7 = scmp.ge.s32.totalorder %s46_s15, 2  ;;  %s55_s16 = sadd.s32 1, %s1943_s23 }
  0x45   : > { %p62_p9 = scmp.ne.s32.totalorder %s1943_s23, %s1939_s22  ;;  %p63_p10 = scmp.eq.s32.totalorder %s1955_s26, 0 }
  0x46   : > { %s2438_s15 = smov (%p48_p7, %s46_s15), 0  ;;  %p68_p12 = scmp.ne.s32.totalorder %s1939_s22, %s1935_s21 }
  0x47   : > { %p2115_p11 = por %p63_p10, %p62_p9  ;;  %s50_s13 = ssub.s32 %s1951_s25, %s2438_s15 }
  0x48   : > { %p213_p6 = scmp.eq.s32.totalorder %s2043_s27, 1  ;;  %p53_p13 = scmp.eq.s32.totalorder %s50_s13, 0 }
  0x49   : > { %p2126_p0 = por %p2409_p1, %p68_p12  ;;  %p219_p4 = scmp.eq.s32.totalorder %s1385_s7, 1 }
  0x4a   : > { %p2130_p2 = por %p213_p6, %p62_p9  ;;  %p1581_p7 = scmp.lt.s32.totalorder %s1955_s26, 2 }
  0x4b   : > { %s2135_s19 = scalar_select %p53_p13, %s1943_s23, %s55_s16  }
  0x4c   : > { %p2137_p8 = por %p219_p4, %p68_p12  ;;  %s294_s29 = sand.u32 1, %s1943_s23  }
  0x4d   : > { %s1393_s30 = sshll.u32 %s1951_s25, 6  ;;  %s1392_s8 = sshll.u32 %s294_s29, 2 }
  0x4e   : > { %s2423_s0 = sld [smem:[#allocation24_spill]]  ;;  %s298_s12 = scalar_lea.vmem [#allocation6], %s1392_s8 }
  0x4f   : > { %s306_s13 = sshll.u32 %s298_s12, 4  ;;  %p2149_p9 = pnand %p1581_p7, %p2115_p11  ;;  %s307_s13 = int_to_ptr.vmem [resolvable:$true] %s306_s13 }
  0x50   : > { %s2156_s3 = scalar_lea.hbm %s2403_s1, %s1393_s30  ;;  %s295_s4 = scalar_lea.sflag [#allocation7], %s294_s29 }
  0x51   : > { %p1805_p10 = pneg %p2149_p9  ;;  %s1816_s9 = scalar_lea.vmem %s307_s13, 64 }
  0x52   : > { %p1817_p12 = scmp.ne.s32.totalorder %s307_s13, %s1816_s9  ;;  %s1963_s17 = smov [#allocation6]  }
  0x53   : > { %s1821_s10 = sshll.u32 %s1963_s17, 4  ;;  %s1822_s10 = int_to_ptr.vmem [resolvable:$false] %s1821_s10 }
  0x54   : > { %s304_s11 = scalar_lea.hbm %s2423_s0, %s1393_s30  ;;  %p1819_p6 = pnand %p1817_p12, %p1805_p10 }
  0x55   : > { %s1823_s12 = scalar_lea.vmem %s1822_s10, 128  ;;  %p1824_p13 = scmp.lt.s32.totalorder %s307_s13, %s1822_s10 }
  0x56   : > { %p1820_p11 = pneg %p1819_p6  ;;  %p1825_p4 = scmp.lt.s32.totalorder %s1823_s12, %s1816_s9 }
  0x58   : > { %p1826_p7 = por %p1825_p4, %p1824_p13 }
  0x5a   : > { %p1827_p5 = pnand %p1826_p7, %p1820_p11 }
  0x5c   : > { %1830 = shalt.err (!%p1827_p5)
}
  0x5d   : > { %1569 = dma.hbm_to_vmem [thread:$0]  (!%p2149_p9), %s304_s11, 64, %s307_s13, %s295_s4  }
  0x5e   : > { %s313_s29 = sand.u32 1, %s1955_s26   ;;  %s317_s30 = scalar_lea.vmem [#allocation9], %s1392_s8 }
  0x5f   : > { %s325_s7 = sshll.u32 %s317_s30, 4  ;;  %s314_s16 = scalar_lea.sflag [#allocation10], %s313_s29  ;;  %s326_s7 = int_to_ptr.vmem [resolvable:$true] %s325_s7 }
  0x60   : > { %s1844_s0 = scalar_lea.vmem %s326_s7, 64  ;;  %s1964_s9 = smov [#allocation9]  }
  0x61   : > { %p1845_p12 = scmp.ne.s32.totalorder %s326_s7, %s1844_s0  ;;  %s1849_s17 = sshll.u32 %s1964_s9, 4  ;;  %s1850_s17 = int_to_ptr.vmem [resolvable:$false] %s1849_s17 }
  0x62   : > { %s1851_s10 = scalar_lea.vmem %s1850_s17, 128  ;;  %p1852_p5 = scmp.lt.s32.totalorder %s326_s7, %s1850_s17 }
  0x63   : > { %p1847_p6 = pnand %p1845_p12, %p1805_p10  ;;  %p1853_p11 = scmp.lt.s32.totalorder %s1851_s10, %s1844_s0 }
  0x65   : > { %p1848_p1 = pneg %p1847_p6  ;;  %p1854_p13 = por %p1853_p11, %p1852_p5 }
  0x67   : > { %p1855_p4 = pnand %p1854_p13, %p1848_p1 }
  0x69   : > { %1858 = shalt.err (!%p1855_p4)
}
  0x6a   : > { %1572 = dma.hbm_to_vmem [thread:$0]  (!%p2149_p9), %s2156_s3, 64, %s326_s7, %s314_s16  }
  0x6b   : > { %334 = sbr.rel (%p2048_p3) target bundleno = 1559 (0x617), region = 44  ;;  %s2175_s4 = sand.u32 (!%p2048_p3), 1, %s1939_s22  }
  0x6c   : > { %s1397_s8 = sshll.u32 (!%p2048_p3), %s2175_s4, 2  ;;  %s337_s11 = scalar_lea.sflag (!%p2048_p3), [#allocation7], %s2175_s4 }
  0x6d   : > { %s340_s13 = scalar_lea.vmem (!%p2048_p3), [#allocation6], %s1397_s8 }
  0x70   : > { %1910 = dma.done.wait (%p2126_p0), %s337_s11, 64  }
  0x71   : > { %1912 = vsyncadd (%p2126_p0), %s337_s11, 4294967232  ;;  %s345_s0 = sand.u32 1, %s2043_s27   ;;  %s349_s3 = scalar_lea.vmem [#allocation9], %s1397_s8 }
  0x72   : > { %s346_s2 = scalar_lea.sflag [#allocation10], %s345_s0 }
  0x73   : > { %1914 = dma.done.wait (%p2126_p0), %s346_s2, 64  }
  0x74   : > { %1916 = vsyncadd (%p2126_p0), %s346_s2, 4294967232  ;;  %p2425_p1 = scmp.eq.s32.totalorder %s2043_s27, 0 }
  0x76   : > { %1918 = dma.done.wait (%p2425_p1), [#allocation10], 256   ;;  %p2426_p3 = pmov %p2425_p1 }
  0x77   : > { %p2427_p9 = pmov %p2425_p1 }
  0x78   : > { %1920 = vsyncadd (%p2426_p3), [#allocation10], 4294967040 }
  0x79   : > { %1922 = dma.done.wait (%p2427_p9), [#allocation13], 512   ;;  %p2428_p10 = pmov %p2425_p1 }
  0x7a   : > { %p2429_p7 = pmov %p2425_p1 }
  0x7b   : > { %1924 = vsyncadd (%p2428_p10), [#allocation13], 4294966784 }
  0x7c   : > { %1926 = dma.done.wait (%p2429_p7), [#allocation16], 256   ;;  %p2430_p12 = pmov %p2425_p1 }
  0x7d   : > { %v1965_v0 = vmov 0.0   ;;  %vm1966_vm0 = vmmov 0   ;;  %v1669_v1 = vld [vmem:[#allocation11 + $0x8] sm:$0xff]   ;;  %v1670_v2 = vld [vmem:[#allocation12 + $0x8] sm:$0xff]   ;;  %v1671_v3 = vld [vmem:[#allocation11] sm:$0xff]   ;;  %vm421_vm1 = vcmask 261120  }
  0x7e   : > { %1928 = vsyncadd (%p2430_p12), [#allocation16], 4294967040  ;;  %1459 = vmatprep.subr.bf16.mxu0 %v1965_v0  ;;  %1467 = vmatprep.subr.bf16.mxu1 %v1965_v0  ;;  %v1672_v4 = vld [vmem:[#allocation12] sm:$0xff]   ;;  %v498_v6 = vld [vmem:[%s349_s3] sm:$0xf]  ;;  %vm493_vm2 = vcmask 64512  }
  0x7f   : > { %1463 = vmatprep.mubr.msk.bf16.mxu0 %vm1966_vm0, %v1965_v0  ;;  %1471 = vmatprep.mubr.msk.bf16.mxu1 %vm1966_vm0, %v1965_v0  ;;  %v404_v5 = vld [vmem:[%s340_s13] sm:$0xf]  ;;  %494 = vst.msk [vmem:[#allocation5] sm:$0xff] %vm493_vm2, %v1965_v0  ;;  %495 = vst.msk [vmem:[#allocation5 + $0x8] sm:$0xff] %vm493_vm2, %v1965_v0  ;;  %vm479_vm3 = vcmask 60416   ;;  %s1967_s27 = smov 104  }
  0x80   : > { %1460 = vmatpush3.bf16.msra.mxu0 %v1669_v1  ;;  %1468 = vmatpush3.bf16.msra.mxu1 %v1670_v2  ;;  %496 = vst.msk [vmem:[#allocation5 + $0x10] sm:$0xff] %vm493_vm2, %v1965_v0  ;;  %497 = vst.msk [vmem:[#allocation5 + $0x18] sm:$0xff] %vm493_vm2, %v1965_v0  ;;  %s1968_s28 = smov 120   ;;  %s1969_s14 = smov 112   ;;  %v1426_v41 = vld [vmem:[#allocation15] sm:$0xff]   ;;  %vm484_vm4 = vcmask 7168  }
  0x81   : > { %1461 = vmatprep.subr.bf16.mxu0 %v1965_v0  ;;  %1469 = vmatprep.subr.bf16.mxu1 %v1965_v0  ;;  %v1427_v42 = vunpack.c.l.bf16 %v1426_v41  ;;  %v1970_v49 = vmov -inf   ;;  %489 = vst.msk [vmem:[#allocation4] sm:$0xff] %vm484_vm4, %v1965_v0  ;;  %490 = vst.msk [vmem:[#allocation4 + $0x8] sm:$0xff] %vm484_vm4, %v1965_v0  ;;  %v1971_v50 = vmov 0   ;;  %v1428_v51 = vunpack.c.h.bf16 %v1426_v41  ;;  %v1433_v52 = vld [vmem:[#allocation15 + $0x8] sm:$0xff]   ;;  %s1972_s12 = smov 96  }
  0x82   : > { %485 = vst.msk [vmem:[#allocation3] sm:$0xff] %vm484_vm4, %v1970_v49  ;;  %486 = vst.msk [vmem:[#allocation3 + $0x8] sm:$0xff] %vm484_vm4, %v1970_v49  ;;  %1667 = vset.pattern.permute.xlu0 %v1971_v50  ;;  %1668 = vset.pattern.permute.xlu1 %v1971_v50  ;;  %v1431_v55 = vunpack.c.l.bf16 %v1433_v52  ;;  %v1432_v61 = vunpack.c.h.bf16 %v1433_v52  ;;  %vm901_vm5 = vcmask 1043456   ;;  %s1973_s29 = smov 8   ;;  %s1974_s30 = smov 16   ;;  %vm1156_vm6 = vcmask 130048  }
  0x83   : > { %487 = vst.msk [vmem:[#allocation3 + $0x10] sm:$0xff] %vm484_vm4, %v1970_v49  ;;  %488 = vst.msk [vmem:[#allocation3 + $0x18] sm:$0xff] %vm484_vm4, %v1970_v49  ;;  %s1975_s7 = smov 24   ;;  %vm1158_vm7 = vcmask 195584   ;;  %s1403_s16 = sshll.u32 %s2175_s4, 3 }
  0x84   : > { %1462 = vmatpush3.bf16.msra.mxu0 %v1671_v3  ;;  %1470 = vmatpush3.bf16.msra.mxu1 %v1672_v4  ;;  %491 = vst.msk [vmem:[#allocation4 + $0x10] sm:$0xff] %vm484_vm4, %v1965_v0  ;;  %492 = vst.msk [vmem:[#allocation4 + $0x18] sm:$0xff] %vm484_vm4, %v1965_v0  ;;  %s1422_s9 = sshll.u32 %s1947_s24, 7  ;;  %s398_s17 = scalar_lea.vmem [#allocation17], %s1403_s16 }
  0x85   : > { %1475 = vmatprep.subr.bf16.mxu0 %v1965_v0  ;;  %1481 = vmatprep.subr.bf16.mxu1 %v1965_v0  ;;  %s1236_s10 = sshll.u32 %s398_s17, 4  ;;  %s2353_s13 = scalar_lea.hbm %s2408_s6, %s1422_s9  ;;  %s2355_s10 = int_to_ptr.vmem [resolvable:$true] %s1236_s10 }
  0x86   : > { %s1222_s0 = scalar_lea.sflag [#allocation8], %s2175_s4  ;;  %s1859_s2 = scalar_lea.vmem %s2355_s10, 128 }
  0x87   : > { %1464 = vmatmul.mubr.msk.bf16.vlgmr.msra.gmra.mxu0 %vm421_vm1, %v404_v5  ;;  %1472 = vmatmul.mubr.msk.bf16.vlgmr.msra.gmra.mxu1 %vm421_vm1, %v498_v6  ;;  %p1860_p0 = scmp.ne.s32.totalorder %s2355_s10, %s1859_s2  ;;  %s1976_s24 = smov [#allocation17]  }
  0x88   : > { %1477 = vmatprep.mubr.msk.bf16.mxu0 %vm1966_vm0, %v1965_v0  ;;  %1483 = vmatprep.mubr.msk.bf16.mxu1 %vm1966_vm0, %v1965_v0  ;;  %s1863_s3 = sshll.u32 %s1976_s24, 4  ;;  %s1864_s3 = int_to_ptr.vmem [resolvable:$false] %s1863_s3 }
  0x89   : > { %p1861_p6 = pnand %p1860_p0, %p2130_p2  ;;  %p1866_p11 = scmp.lt.s32.totalorder %s2355_s10, %s1864_s3 }
  0x8b   : > { %p1862_p5 = pneg %p1861_p6 }
 0x147   : > { %v459_v7 = vpop.f32.mrf.mxu0  ;;  %v553_v9 = vpop.f32.mrf.mxu1 }
 0x148   : > { %v475_v8 = vpack.c.bf16 %v459_v7, %v459_v7  ;;  %v1662_v11 = vpack.i.bf16 %v553_v9, %v459_v7  ;;  %v2224_v12 = vpack.c.bf16 %v553_v9, %v553_v9 }
 0x149   : > { %v1465_v10 = vpop.f32.mrf.mxu0  ;;  %v1473_v13 = vpop.f32.mrf.mxu1 }
 0x14a   : > { %480 = vst.msk [vmem:[#allocation2] sm:$0xf] %vm479_vm3, %v475_v8  ;;  %1663 = vrot.lane.b32.xlu1 %v1662_v11, %s1967_s27  ;;  %1653 = vrot.lane.b32.xlu0 %v1662_v11, %s1968_s28  ;;  %v590_v15 = vsel %vm493_vm2, %v2224_v12, 0  ;;  %v2279_v10 = vld [vmem:[#allocation3] sm:$0xff]  ;;  %s1865_s27 = scalar_lea.vmem %s1864_s3, 256 }
 0x14b   : > { %v462_v14 = vpop.f32.mrf.mxu0  ;;  %v556_v16 = vpop.f32.mrf.mxu1  ;;  %1476 = vmatpush3.bf16.xpose.msra.mxu0 %v590_v15  ;;  %v2289_v15 = vld [vmem:[#allocation3 + $0x8] sm:$0xff]  ;;  %p1867_p13 = scmp.lt.s32.totalorder %s1865_s27, %s1859_s2 }
 0x14c   : > { %1487 = vmatprep.subr.bf16.mxu0 %v1965_v0 }
 0x14d   : > { %v1466_v17 = vpop.f32.mrf.mxu0  ;;  %v1474_v18 = vpop.f32.mrf.mxu1  ;;  %p1868_p4 = por %p1867_p13, %p1866_p11 }
 0x14e   : > { %1658 = vrot.lane.b32.xlu0 %v1662_v11, %s1969_s14  ;;  %v772_v18 = vld [vmem:[#allocation3 + $0x10] sm:$0xff] }
 0x14f   : > { %p1869_p1 = pnand %p1868_p4, %p1862_p5 }
 0x151   : > { %v573_v19 = vld [vmem:[#allocation2] sm:$0xf] }
 0x152   : > { %1478 = vmatmul.mubr.msk.bf16.vlgmr.msra.gmra.mxu0 %vm493_vm2, %v573_v19 }
 0x153   : > { %1489 = vmatprep.mubr.msk.bf16.mxu0 %vm1966_vm0, %v1965_v0 }
 0x1bc   : > { %v1664_v20 = vpop.permute.xlu1 %1663  ;;  %v1654_v21 = vpop.permute.xlu0 %1653 }
 0x1bd   : > { %v1665_v22 = vunpack.i.l.bf16 %v1664_v20  ;;  %v1656_v23 = vunpack.i.h.bf16 %v1654_v21  ;;  %v1655_v24 = vunpack.i.l.bf16 %v1654_v21  ;;  %v1666_v29 = vunpack.i.h.bf16 %v1664_v20 }
 0x1bf   : > { %v478_v25 = vpack.c.bf16 %v1665_v22, %v1665_v22  ;;  %v2233_v26 = vpack.c.bf16 %v1656_v23, %v1656_v23  ;;  %v476_v27 = vpack.c.bf16 %v1655_v24, %v1655_v24  ;;  %v2242_v35 = vpack.c.bf16 %v1666_v29, %v1666_v29  ;;  %v2299_v22 = vld [vmem:[#allocation3 + $0x18] sm:$0xff] }
 0x1c0   : > { %v1659_v28 = vpop.permute.xlu0 %1658 }
 0x1c1   : > { %483 = vst.msk [vmem:[#allocation2 + $0xc] sm:$0xf] %vm479_vm3, %v478_v25  ;;  %481 = vst.msk [vmem:[#allocation2 + $0x4] sm:$0xf] %vm479_vm3, %v476_v27  ;;  %v1661_v30 = vunpack.i.h.bf16 %v1659_v28  ;;  %v1660_v31 = vunpack.i.l.bf16 %v1659_v28  ;;  %v636_v32 = vsel %vm493_vm2, %v2233_v26, 0  ;;  %v728_v38 = vsel %vm493_vm2, %v2242_v35, 0 }
 0x1c2   : > { %1482 = vmatpush3.bf16.xpose.msra.mxu1 %v636_v32 }
 0x1c3   : > { %v2239_v33 = vpack.c.bf16 %v1661_v30, %v1661_v30  ;;  %v477_v34 = vpack.c.bf16 %v1660_v31, %v1660_v31  ;;  %1493 = vmatprep.subr.bf16.mxu1 %v1965_v0 }
 0x1c5   : > { %482 = vst.msk [vmem:[#allocation2 + $0x8] sm:$0xf] %vm479_vm3, %v477_v34  ;;  %v682_v36 = vsel %vm493_vm2, %v2239_v33, 0 }
 0x1c6   : > { %1488 = vmatpush3.bf16.xpose.msra.mxu0 %v682_v36 }
 0x1c7   : > { %1499 = vmatprep.subr.bf16.mxu0 %v1965_v0 }
 0x1c8   : > { %v574_v37 = vld [vmem:[#allocation2 + $0x4] sm:$0xf]  ;;  %v576_v40 = vld [vmem:[#allocation2 + $0xc] sm:$0xf] }
 0x1c9   : > { %1484 = vmatmul.mubr.msk.bf16.vlgmr.msra.gmra.mxu1 %vm493_vm2, %v574_v37 }
 0x1ca   : > { %1494 = vmatpush3.bf16.xpose.msra.mxu1 %v728_v38  ;;  %1495 = vmatprep.mubr.msk.bf16.mxu1 %vm1966_vm0, %v1965_v0 }
 0x1cb   : > { %1505 = vmatprep.subr.bf16.mxu1 %v1965_v0 }
 0x1cc   : > { %v575_v39 = vld [vmem:[#allocation2 + $0x8] sm:$0xf] }
 0x1cd   : > { %1490 = vmatmul.mubr.msk.bf16.vlgmr.msra.gmra.mxu0 %vm493_vm2, %v575_v39 }
 0x1ce   : > { %1501 = vmatprep.mubr.msk.bf16.mxu0 %vm1966_vm0, %v1965_v0 }
 0x1d1   : > { %1496 = vmatmul.mubr.msk.bf16.vlgmr.msra.gmra.mxu1 %vm493_vm2, %v576_v40 }
 0x1d2   : > { %1507 = vmatprep.mubr.msk.bf16.mxu1 %vm1966_vm0, %v1965_v0 }
 0x212   : > { %v626_v43 = vpop.f32.mrf.mxu0 }
 0x213   : > { %v2260_v44 = vadd.f32 %v1427_v42, %v626_v43 }
 0x214   : > { %v1479_v45 = vpop.f32.mrf.mxu0 }
 0x215   : > { %v774_v46 = vsel %vm493_vm2, %v2260_v44, -inf }
 0x216   : > { %775 = vmax.xlane.f32.xlu1 %v774_v46  ;;  %v629_v47 = vpop.f32.mrf.mxu0 }
 0x218   : > { %v1480_v48 = vpop.f32.mrf.mxu0 }
 0x289   : > { %v672_v53 = vpop.f32.mrf.mxu1 }
 0x28a   : > { %v673_v54 = vadd.f32 %v1428_v51, %v672_v53 }
 0x28b   : > { %v1485_v56 = vpop.f32.mrf.mxu1 }
 0x28c   : > { %v777_v57 = vsel %vm493_vm2, %v673_v54, -inf }
 0x28d   : > { %778 = vmax.xlane.f32.xlu0 %v777_v57  ;;  %v675_v58 = vpop.f32.mrf.mxu1  ;;  %v718_v59 = vpop.f32.mrf.mxu0 }
 0x28e   : > { %v719_v60 = vadd.f32 %v1431_v55, %v718_v59 }
 0x28f   : > { %v1486_v62 = vpop.f32.mrf.mxu1  ;;  %v1491_v63 = vpop.f32.mrf.mxu0 }
 0x290   : > { %v780_v1 = vsel %vm493_vm2, %v719_v60, -inf }
 0x291   : > { %v764_v2 = vpop.f32.mrf.mxu1  ;;  %781 = vmax.xlane.f32.xlu0 %v780_v1  ;;  %v721_v3 = vpop.f32.mrf.mxu0 }
 0x292   : > { %v765_v4 = vadd.f32 %v1432_v61, %v764_v2  ;;  %v835_v2 = vld [vmem:[#allocation4 + $0x8] sm:$0xff] }
 0x293   : > { %v1492_v5 = vpop.f32.mrf.mxu0  ;;  %v1497_v6 = vpop.f32.mrf.mxu1 }
 0x294   : > { %v783_v7 = vsel %vm493_vm2, %v765_v4, -inf  ;;  %v834_v6 = vld [vmem:[#allocation4] sm:$0xff] }
 0x295   : > { %v767_v8 = vpop.f32.mrf.mxu1  ;;  %784 = vmax.xlane.f32.xlu1 %v783_v7  ;;  %v836_v7 = vld [vmem:[#allocation4 + $0x10] sm:$0xff] }
 0x297   : > { %v1498_v9 = vpop.f32.mrf.mxu1 }
 0x29f   : > { %v776_v11 = vpop.xlane.xlu1 %775 }
 0x2a0   : > { %v2282_v13 = vmax.f32 %v2279_v10, %v776_v11 }
 0x2a2   : > { %v790_v14 = vsub.f32 %v2279_v10, %v2282_v13  ;;  %1100 = vst.msk [vmem:[#allocation3] sm:$0xff] %vm484_vm4, %v2282_v13 }
 0x2a4   : > { %v794_v1 = vmul.f32 1.442695, %v790_v14 }
 0x2a7   : > { %804 = vperm.xlu0 %1667, %v2282_v13  }
 0x316   : > { %v779_v16 = vpop.xlane.xlu0 %778 }
 0x317   : > { %v2292_v17 = vmax.f32 %v2289_v15, %v779_v16 }
 0x319   : > { %v791_v19 = vsub.f32 %v2289_v15, %v2292_v17  ;;  %1101 = vst.msk [vmem:[#allocation3 + $0x8] sm:$0xff] %vm484_vm4, %v2292_v17  ;;  %809 = vperm.xlu1 %1668, %v2292_v17   ;;  %v837_v17 = vld [vmem:[#allocation4 + $0x18] sm:$0xff] }
 0x31a   : > { %v782_v20 = vpop.xlane.xlu0 %781 }
 0x31b   : > { %v788_v21 = vmax.f32 %v772_v18, %v782_v20 }
 0x31d   : > { %v792_v23 = vsub.f32 %v772_v18, %v788_v21  ;;  %1102 = vst.msk [vmem:[#allocation3 + $0x10] sm:$0xff] %vm484_vm4, %v788_v21  ;;  %814 = vperm.xlu1 %1668, %v788_v21  }
 0x31e   : > { %v785_v24 = vpop.xlane.xlu1 %784 }
 0x31f   : > { %v789_v25 = vmax.f32 %v2299_v22, %v785_v24  ;;  %v798_v50 = vmul.f32 1.442695, %v792_v23 }
 0x321   : > { %v793_v27 = vsub.f32 %v2299_v22, %v789_v25  ;;  %1103 = vst.msk [vmem:[#allocation3 + $0x18] sm:$0xff] %vm484_vm4, %v789_v25  ;;  %819 = vperm.xlu1 %1668, %v789_v25  }
 0x322   : > { %v805_v28 = vpop.permute.xlu0 %804 }
 0x323   : > { %v822_v29 = vsub.f32 %v2260_v44, %v805_v28  ;;  %v800_v57 = vmul.f32 1.442695, %v793_v27 }
 0x325   : > { %896 = vrot.lane.b32.xlu1 %v2224_v12, %s1972_s12  ;;  %v826_v30 = vmul.f32 1.442695, %v822_v29  ;;  %v864_v29 = vld [vmem:[#allocation5 + $0x8] sm:$0xff] }
 0x327   : > { %1675 = vpow2.f32 %v826_v30 }
 0x329   : > { %946 = vrot.lane.b32.xlu1 %v2233_v26, %s1972_s12 }
 0x32d   : > { %995 = vrot.lane.b32.xlu1 %v2239_v33, %s1972_s12 }
 0x331   : > { %1044 = vrot.lane.b32.xlu1 %v2242_v35, %s1972_s12 }
 0x334   : > { %v1676_v33 = vpop.eup %1675 }
 0x335   : > { %v891_v41 = vpack.c.bf16 %v1676_v33, %v1676_v33  ;;  %v842_v52 = vsel %vm493_vm2, %v1676_v33, 0.0 }
 0x394   : > { %v810_v31 = vpop.permute.xlu1 %809 }
 0x395   : > { %v823_v32 = vsub.f32 %v673_v54, %v810_v31 }
 0x397   : > { %v828_v34 = vmul.f32 1.442695, %v823_v32 }
 0x398   : > { %v815_v36 = vpop.permute.xlu1 %814 }
 0x399   : > { %1677 = vpow2.f32 %v828_v34  ;;  %v824_v37 = vsub.f32 %v719_v60, %v815_v36  ;;  %v796_v60 = vmul.f32 1.442695, %v791_v19 }
 0x39b   : > { %v830_v38 = vmul.f32 1.442695, %v824_v37  ;;  %v865_v37 = vld [vmem:[#allocation5 + $0x10] sm:$0xff] }
 0x39c   : > { %v820_v39 = vpop.permute.xlu1 %819 }
 0x39d   : > { %1679 = vpow2.f32 %v830_v38  ;;  %v825_v12 = vsub.f32 %v765_v4, %v820_v39 }
 0x39f   : > { %v832_v26 = vmul.f32 1.442695, %v825_v12 }
 0x3a0   : > { %v897_v40 = vpop.permute.xlu1 %896 }
 0x3a1   : > { %1681 = vpow2.f32 %v832_v26  ;;  %v903_v35 = vsel %vm901_vm5, %v897_v40, 0 }
 0x3a2   : > { %1500 = vmatpush3.bf16.msra.mxu0 %v903_v35  ;;  %1683 = vpow2.f32 %v798_v50 }
 0x3a3   : > { %1511 = vmatprep.subr.bf16.mxu0 %v1965_v0  ;;  %1685 = vpow2.f32 %v800_v57 }
 0x3a4   : > { %v947_v42 = vpop.permute.xlu1 %946  ;;  %1687 = vpow2.f32 %v796_v60 }
 0x3a5   : > { %v952_v43 = vsel %vm901_vm5, %v947_v42, 0  ;;  %1502 = vmatmul.mubr.msk.bf16.vlgmr.msra.gmra.mxu0 %vm493_vm2, %v891_v41  ;;  %1689 = vpow2.f32 %v794_v1  ;;  %v866_v41 = vld [vmem:[#allocation5 + $0x18] sm:$0xff] }
 0x3a6   : > { %v1678_v44 = vpop.eup %1677  ;;  %1506 = vmatpush3.bf16.msra.mxu1 %v952_v43  ;;  %1513 = vmatprep.mubr.msk.bf16.mxu0 %vm1966_vm0, %v1965_v0 }
 0x3a7   : > { %v845_v45 = vsel %vm493_vm2, %v1678_v44, 0.0  ;;  %v892_v46 = vpack.c.bf16 %v1678_v44, %v1678_v44  ;;  %1517 = vmatprep.subr.bf16.mxu1 %v1965_v0 }
 0x3a8   : > { %846 = vadd.xlane.f32.xlu1 %v845_v45  ;;  %v996_v47 = vpop.permute.xlu1 %995 }
 0x3a9   : > { %v1001_v48 = vsel %vm901_vm5, %v996_v47, 0  ;;  %1508 = vmatmul.mubr.msk.bf16.vlgmr.msra.gmra.mxu1 %vm493_vm2, %v892_v46 }
 0x3aa   : > { %v1680_v49 = vpop.eup %1679  ;;  %1512 = vmatpush3.bf16.msra.mxu0 %v1001_v48  ;;  %1519 = vmatprep.mubr.msk.bf16.mxu1 %vm1966_vm0, %v1965_v0 }
 0x3ab   : > { %v848_v51 = vsel %vm493_vm2, %v1680_v49, 0.0  ;;  %v893_v53 = vpack.c.bf16 %v1680_v49, %v1680_v49  ;;  %1523 = vmatprep.subr.bf16.mxu0 %v1965_v0 }
 0x3ac   : > { %849 = vadd.xlane.f32.xlu0 %v848_v51  ;;  %v1045_v54 = vpop.permute.xlu1 %1044  ;;  %843 = vadd.xlane.f32.xlu1 %v842_v52 }
 0x3ad   : > { %v1050_v55 = vsel %vm901_vm5, %v1045_v54, 0  ;;  %1514 = vmatmul.mubr.msk.bf16.vlgmr.msra.gmra.mxu0 %vm493_vm2, %v893_v53 }
 0x3ae   : > { %v1682_v56 = vpop.eup %1681  ;;  %1518 = vmatpush3.bf16.msra.mxu1 %v1050_v55  ;;  %1527 = vmatprep.mubr.msk.bf16.mxu0 %vm1966_vm0, %v1965_v0  ;;  %v1673_v55 = vld [vmem:[#allocation14 + $0x8] sm:$0xff]  }
 0x3af   : > { %v851_v58 = vsel %vm493_vm2, %v1682_v56, 0.0  ;;  %v894_v59 = vpack.c.bf16 %v1682_v56, %v1682_v56  ;;  %v1684_v61 = vpop.eup %1683  ;;  %1524 = vmatpush3.bf16.msra.mxu0 %v1673_v55  ;;  %v1674_v56 = vld [vmem:[#allocation14] sm:$0xff]  }
 0x3b0   : > { %852 = vadd.xlane.f32.xlu0 %v851_v58  ;;  %v1686_v62 = vpop.eup %1685  ;;  %v840_v11 = vmul.f32 %v1684_v61, %v836_v7  ;;  %1525 = vmatprep.subr.bf16.mxu0 %v1965_v0 }
 0x3b1   : > { %1520 = vmatmul.mubr.msk.bf16.vlgmr.msra.gmra.mxu1 %vm493_vm2, %v894_v59  ;;  %v1688_v63 = vpop.eup %1687  ;;  %v841_v10 = vmul.f32 %v1686_v62, %v837_v17 }
 0x3b2   : > { %v839_v3 = vmul.f32 %v1688_v63, %v835_v2  ;;  %v1690_v4 = vpop.eup %1689 }
 0x3b3   : > { %v838_v9 = vmul.f32 %v1690_v4, %v834_v6  ;;  %1526 = vmatpush3.bf16.msra.mxu0 %v1674_v56 }
 0x3bd   : > { %879 = vperm.xlu1 %1668, %v1684_v61  }
 0x3c1   : > { %884 = vperm.xlu1 %1668, %v1686_v62  }
 0x3c6   : > { %874 = vperm.xlu0 %1667, %v1688_v63   ;;  %v863_v63 = vld [vmem:[#allocation5] sm:$0xff] }
 0x431   : > { %v847_v5 = vpop.xlane.xlu1 %846 }
 0x432   : > { %v855_v8 = vadd.f32 %v847_v5, %v839_v3 }
 0x434   : > { %860 = vst.msk [vmem:[#allocation4 + $0x8] sm:$0xff] %vm484_vm4, %v855_v8 }
 0x435   : > { %v844_v15 = vpop.xlane.xlu1 %843  ;;  %v850_v16 = vpop.xlane.xlu0 %849 }
 0x436   : > { %v854_v18 = vadd.f32 %v844_v15, %v838_v9  ;;  %v856_v19 = vadd.f32 %v850_v16, %v840_v11 }
 0x438   : > { %859 = vst.msk [vmem:[#allocation4] sm:$0xff] %vm484_vm4, %v854_v18  ;;  %861 = vst.msk [vmem:[#allocation4 + $0x10] sm:$0xff] %vm484_vm4, %v856_v19 }
 0x439   : > { %v853_v13 = vpop.xlane.xlu0 %852  ;;  %v880_v32 = vpop.permute.xlu1 %879 }
 0x43a   : > { %v857_v14 = vadd.f32 %v853_v13, %v841_v10  ;;  %v889_v40 = vmul.f32 %v880_v32, %v865_v37 }
 0x43b   : > { %v1112_v20 = vld [vmem:[#allocation4 + $0x8] sm:$0xff] }
 0x43c   : > { %862 = vst.msk [vmem:[#allocation4 + $0x18] sm:$0xff] %vm484_vm4, %v857_v14  ;;  %1691 = vrcp.f32 %v1112_v20 }
 0x43d   : > { %v885_v35 = vpop.permute.xlu1 %884 }
 0x43e   : > { %v890_v47 = vmul.f32 %v885_v35, %v866_v41 }
 0x43f   : > { %v1113_v21 = vld [vmem:[#allocation4 + $0x10] sm:$0xff]  ;;  %v1111_v23 = vld [vmem:[#allocation4] sm:$0xff] }
 0x440   : > { %1693 = vrcp.f32 %v1113_v21 }
 0x441   : > { %v875_v30 = vpop.permute.xlu0 %874 }
 0x442   : > { %v888_v36 = vmul.f32 %v875_v30, %v864_v29 }
 0x443   : > { %v1114_v22 = vld [vmem:[#allocation4 + $0x18] sm:$0xff] }
 0x444   : > { %1695 = vrcp.f32 %v1114_v22 }
 0x445   : > { %1697 = vrcp.f32 %v1111_v23 }
 0x449   : > { %v1692_v24 = vpop.eup %1691 }
 0x44a   : > { %1126 = vperm.xlu0 %1667, %v1692_v24  }
 0x44d   : > { %v1694_v25 = vpop.eup %1693 }
 0x44e   : > { %1131 = vperm.xlu1 %1668, %v1694_v25  }
 0x451   : > { %v1696_v27 = vpop.eup %1695 }
 0x452   : > { %869 = vperm.xlu1 %1668, %v1690_v4   ;;  %1136 = vperm.xlu0 %1667, %v1696_v27   ;;  %v1698_v28 = vpop.eup %1697 }
 0x456   : > { %1121 = vperm.xlu0 %1667, %v1698_v28  }
 0x465   : > { %v939_v31 = vpop.f32.mrf.mxu0 }
 0x467   : > { %v1503_v34 = vpop.f32.mrf.mxu0 }
 0x469   : > { %v942_v38 = vpop.f32.mrf.mxu0  ;;  %v988_v39 = vpop.f32.mrf.mxu1 }
 0x46a   : > { %v1093_v12 = vadd.f32 %v988_v39, %v888_v36 }
 0x46b   : > { %v1504_v26 = vpop.f32.mrf.mxu0  ;;  %v1509_v33 = vpop.f32.mrf.mxu1 }
 0x46c   : > { %1097 = vst.msk [vmem:[#allocation5 + $0x8] sm:$0xff] %vm493_vm2, %v1093_v12 }
 0x46d   : > { %v991_v42 = vpop.f32.mrf.mxu1  ;;  %v1037_v43 = vpop.f32.mrf.mxu0 }
 0x46e   : > { %v1094_v44 = vadd.f32 %v1037_v43, %v889_v40 }
 0x46f   : > { %v1510_v45 = vpop.f32.mrf.mxu1  ;;  %v1515_v46 = vpop.f32.mrf.mxu0 }
 0x470   : > { %1098 = vst.msk [vmem:[#allocation5 + $0x10] sm:$0xff] %vm493_vm2, %v1094_v44 }
 0x471   : > { %v1040_v48 = vpop.f32.mrf.mxu0  ;;  %v1086_v49 = vpop.f32.mrf.mxu1 }
 0x472   : > { %v1095_v50 = vadd.f32 %v1086_v49, %v890_v47 }
 0x473   : > { %v1516_v51 = vpop.f32.mrf.mxu0  ;;  %v1521_v52 = vpop.f32.mrf.mxu1  ;;  %v1108_v57 = vld [vmem:[#allocation5 + $0x8] sm:$0xff] }
 0x474   : > { %1099 = vst.msk [vmem:[#allocation5 + $0x18] sm:$0xff] %vm493_vm2, %v1095_v50 }
 0x475   : > { %v1089_v53 = vpop.f32.mrf.mxu1 }
 0x477   : > { %v1522_v54 = vpop.f32.mrf.mxu1  ;;  %v1109_v61 = vld [vmem:[#allocation5 + $0x10] sm:$0xff] }
 0x47b   : > { %v1110_v2 = vld [vmem:[#allocation5 + $0x18] sm:$0xff] }
 0x4c5   : > { %v1127_v58 = vpop.permute.xlu0 %1126 }
 0x4c6   : > { %v1140_v59 = vmul.f32 %v1127_v58, %v1108_v57 }
 0x4c8   : > { %1144 = vrot.lane.b32.xlu1 %v1140_v59, %s1973_s29 }
 0x4c9   : > { %v1132_v60 = vpop.permute.xlu1 %1131 }
 0x4ca   : > { %v1141_v62 = vmul.f32 %v1132_v60, %v1109_v61 }
 0x4cc   : > { %1148 = vrot.lane.b32.xlu0 %v1141_v62, %s1974_s30 }
 0x4cd   : > { %v870_v1 = vpop.permute.xlu1 %869  ;;  %v1137_v3 = vpop.permute.xlu0 %1136 }
 0x4ce   : > { %v887_v4 = vmul.f32 %v870_v1, %v863_v63  ;;  %v1142_v5 = vmul.f32 %v1137_v3, %v1110_v2 }
 0x4d0   : > { %v1092_v6 = vadd.f32 %v939_v31, %v887_v4  ;;  %1152 = vrot.lane.b32.xlu1 %v1142_v5, %s1975_s7 }
 0x4d1   : > { %v1122_v0 = vpop.permute.xlu0 %1121 }
 0x4d2   : > { %1096 = vst.msk [vmem:[#allocation5] sm:$0xff] %vm493_vm2, %v1092_v6 }
 0x4d9   : > { %v1107_v7 = vld [vmem:[#allocation5] sm:$0xff] }
 0x4da   : > { %v1139_v9 = vmul.f32 %v1122_v0, %v1107_v7 }
 0x53a   : > { %v1145_v8 = vpop.permute.xlu1 %1144 }
 0x53b   : > { %v1155_v15 = vsel %vm493_vm2, %v1139_v9, %v1145_v8 }
 0x53e   : > { %v1149_v11 = vpop.permute.xlu0 %1148 }
 0x53f   : > { %v1157_v16 = vsel %vm1156_vm6, %v1155_v15, %v1149_v11 }
 0x542   : > { %v1153_v17 = vpop.permute.xlu1 %1152 }
 0x543   : > { %v1159_v18 = vsel %vm1158_vm7, %v1157_v16, %v1153_v17 }
 0x544   : > { %v1160_v19 = vpack.c.bf16 %v1159_v18, %v1159_v18 }
 0x546   : > { %1528 = vmatmul.mubr.msk.bf16.vlgmr.msra.gmra.mxu0 %vm421_vm1, %v1160_v19 }
 0x606   : > { %v1214_v10 = vpop.f32.mrf.mxu0 }
 0x607   : > { %1220 = vst.msk [vmem:[%s398_s17] sm:$0xff] %vm421_vm1, %v1214_v10 }
 0x608   : > { %v1529_v13 = vpop.f32.mrf.mxu0 }
 0x609   : > { %1872 = shalt.err (!%p1869_p1)
}
 0x60a   : > { %s1873_s28 = scalar_lea.hbm %s2353_s13, 128  ;;  %s1877_s12 = scalar_lea.hbm %s2408_s6, 256 }
 0x60b   : > { %p1874_p3 = scmp.ne.s32.totalorder %s2353_s13, %s1873_s28  ;;  %p1878_p7 = scmp.lt.s32.totalorder %s2353_s13, %s2408_s6 }
 0x60c   : > { %p1879_p12 = scmp.lt.s32.totalorder %s1877_s12, %s1873_s28 }
 0x60d   : > { %p1875_p9 = pnand %p1874_p3, %p2130_p2 }
 0x60e   : > { %p1880_p0 = por %p1879_p12, %p1878_p7 }
 0x60f   : > { %p1876_p10 = pneg %p1875_p9 }
 0x611   : > { %p1881_p6 = pnand %p1880_p0, %p1876_p10 }
 0x613   : > { %1884 = shalt.err (!%p1881_p6)
}
 0x614   : > { %1551 = dma.vmem_to_hbm [thread:$0]  (%p2130_p2), %s2355_s10, 128, %s2353_s13, %s1222_s0   ;;  %v1217_v14 = vpop.f32.mrf.mxu0 }
 0x616   : > { %v1530_v20 = vpop.f32.mrf.mxu0 }
 0x617 PF: > { %s1248_s7 = sand.u32 1, %s1935_s21   ;;  %p2431_p5 = scmp.ge.s32.totalorder %s1955_s26, 2 }
 0x618   : > { %s1249_s16 = scalar_lea.sflag [#allocation8], %s1248_s7 }
 0x619   : > { %p1574_p11 = pnand %p2431_p5, %p2137_p8 }
 0x61b   : > { %p1575_p13 = pneg %p1574_p11 }
 0x61d   : > { %1930 = dma.done.wait (%p1575_p13), %s1249_s16, 128  }
 0x61e   : > { %1932 = vsyncadd (%p1575_p13), %s1249_s16, 4294967168  ;;  %s27_s26 = sadd.s32 1, %s1955_s26   ;;  %s2432_s21 = smov %s1939_s22 }
 0x61f   : > { %p24_p4 = scmp.ge.s32.totalorder %s27_s26, 4   ;;  %s2433_s22 = smov %s1943_s23 }
 0x620   : > { %s2434_s23 = smov %s2135_s19  ;;  %s2435_s24 = smov %s1951_s25 }
 0x621   : > { %s2436_s25 = smov %s2438_s15  ;;  %26 = sbr.rel (!%p24_p4) target bundleno = 15 (0xf), region = 127 }
 0x626   :  { %1254 = vsyncpa [#allocation7], 1 }
 0x627   :  { %1256 = vsyncpa [#allocation7 + $0x1], 1 }
 0x628   :  { %1257 = vsyncpa [#allocation10], 1 }
 0x629   :  { %1259 = vsyncpa [#allocation10 + $0x1], 1 }
 0x62a   :  { %1260 = vsyncpa [#allocation13], 1 }
 0x62b   :  { %1261 = vsyncpa [#allocation16], 1 }
 0x62c   :  { %1262 = vsyncpa [#allocation8], 1 }
 0x62d   :  { %1264 = vsyncpa [#allocation8 + $0x1], 1 }

</bundles_post_ra>
